<compile_context>
chip_gen: v7x
topology: tpu7x:2x2x1
jax: 0.10.0
libtpu: 0.0.40
codegen_flags: <defaults>
</compile_context>

<pallas_src>
import functools

import jax
import jax.numpy as jnp
from jax.experimental import pallas as pl
from jax.experimental.pallas import tpu as pltpu

# Emotion polarity sets (class indices 0..7)
POSITIVE = {1, 4, 6, 7}
NEGATIVE = {0, 2, 3, 5}
NUM_CLASSES = 8
# Bit i of this mask is 1 iff class i is in POSITIVE: 0b11010010 = 210.
POS_BITMASK = sum(1 << i for i in POSITIVE)


def _make_kernel(batch_size: int, num_classes: int, tile_b: int, inner_steps: int):
    inv_b = 1.0 / float(batch_size)

    def kernel(lam_ref, logits_ref, y_ref, out_ref, acc_ref):
        p = pl.program_id(0)          # core-parallel axis (v7x: one value per TC)
        i = pl.program_id(1)          # carried batch axis

        @pl.when(i == 0)
        def _():
            acc_ref[...] = jnp.zeros_like(acc_ref)

        lam = lam_ref[0]                                  # f32 scalar from SMEM

        logits = logits_ref[...].astype(jnp.float32)      # (C, TB), cast in VMEM
        y = y_ref[...]                                    # (1, TB) int32

        row = jax.lax.broadcasted_iota(jnp.int32, logits.shape, 0)   # class idx (C, TB)
        lane = jax.lax.broadcasted_iota(jnp.int32, y.shape, 1)       # (1, TB)

        # --- per-sample cross entropy (stable log-softmax), sublane reductions ---
        mx = jnp.max(logits, axis=0, keepdims=True)                  # (1, TB)
        shifted = logits - mx                                        # (C, TB)
        lse = jnp.log(jnp.sum(jnp.exp(shifted), axis=0, keepdims=True))  # (1, TB)
        onehot = row == y                                            # (C, TB) bool
        ce = lse - jnp.sum(jnp.where(onehot, shifted, 0.0), axis=0, keepdims=True)

        # --- predicted label = first index attaining the max (matches argmax/topk) ---
        is_max = logits == mx
        pred = jnp.min(jnp.where(is_max, row, num_classes), axis=0, keepdims=True)

        # --- polarity via constant bitmask (no pos-mask input) ---
        y_safe = jnp.clip(y, 0, num_classes - 1)      # also guards garbage overhang labels
        p_safe = jnp.clip(pred, 0, num_classes - 1)
        y_pos = jnp.bitwise_and(jnp.right_shift(POS_BITMASK, y_safe), 1)
        p_pos = jnp.bitwise_and(jnp.right_shift(POS_BITMASK, p_safe), 1)
        mismatch = (y_pos != p_pos).astype(jnp.float32)
        weight = 1.0 + lam * mismatch                                # (1, TB)

        # --- mask padded / duplicated / out-of-range lanes (no array padding!) ---
        flat_block = p * inner_steps + i          # UNclamped flat block index
        valid = (flat_block * tile_b + lane) < batch_size
        contrib = jnp.where(valid, ce * weight, 0.0)                 # (1, TB)

        acc_ref[...] += jnp.sum(contrib, axis=1, keepdims=True)      # (1, 1)

        @pl.when(i == pl.num_programs(1) - 1)
        def _():
            # Write this core's scaled partial into element [0,0] of its own
            # (8,128) output block, zeros elsewhere (wrapper sums everything).
            r8 = jax.lax.broadcasted_iota(jnp.int32, out_ref.shape, 0)
            l8 = jax.lax.broadcasted_iota(jnp.int32, out_ref.shape, 1)
            out_ref[...] = jnp.where((r8 == 0) & (l8 == 0),
                                     acc_ref[...] * inv_b, 0.0)

    return kernel


@functools.partial(jax.jit, static_argnames=("tile_b",))
def pcceve8_loss_cb(logits_cb: jax.Array, y: jax.Array, lambda_0=0.0,
                    tile_b: int | None = None) -> jax.Array:
    """logits_cb: (C, B) logits in native dtype (lane-dense batch); y: (B,) ints."""
    c, b = logits_cb.shape
    assert c == NUM_CLASSES

    # Tile the batch: aim for >= 2 blocks (so both v7x cores get work), cap at
    # 64K lanes per block; amortizes per-grid-step overhead, tiny vs. VMEM.
    if tile_b is None:
        tile_b = 128 * min(512, max(1, pl.cdiv(b, 2 * 128)))
    assert tile_b % 128 == 0
    grid_b = pl.cdiv(b, tile_b)                 # number of real batch blocks
    num_cores = 2 if grid_b >= 2 else 1         # leading "parallel" axis (v7x: 2 TCs)
    inner = pl.cdiv(grid_b, num_cores)
    last_block = grid_b - 1

    y_row = y.astype(jnp.int32).reshape(1, b)               # free view, no copy
    lam = jnp.full((1,), lambda_0, jnp.float32)              # SMEM scalar

    def block_idx(pp, ii):
        # Clamp: an odd grid_b split over 2 cores makes the final step re-read
        # the last real block; its contribution is fully masked by `valid`.
        return jnp.minimum(pp * inner + ii, last_block)

    itemsize = jnp.dtype(logits_cb.dtype).itemsize
    block_bytes = c * tile_b * itemsize + tile_b * 4
    vmem_limit = int(min(32 * 1024 * 1024, max(16 * 1024 * 1024, 4 * block_bytes)))

    kernel = _make_kernel(b, c, tile_b, inner)
    out = pl.pallas_call(
        kernel,
        out_shape=jax.ShapeDtypeStruct((8 * num_cores, 128), jnp.float32),
        grid_spec=pltpu.PrefetchScalarGridSpec(
            num_scalar_prefetch=0,
            grid=(num_cores, inner),
            in_specs=[
                pl.BlockSpec(memory_space=pltpu.MemorySpace.SMEM),    # lambda_0 scalar
                pl.BlockSpec((c, tile_b), lambda pp, ii: (0, block_idx(pp, ii))),
                pl.BlockSpec((1, tile_b), lambda pp, ii: (0, block_idx(pp, ii))),
            ],
            out_specs=pl.BlockSpec((8, 128), lambda pp, ii: (pp, 0)),
            scratch_shapes=[pltpu.VMEM((1, 1), jnp.float32)],          # per-core running sum
        ),
        compiler_params=pltpu.CompilerParams(
            # axis 0: independent per-core partials -> parallel (v7x uses both TCs);
            # axis 1: accumulator carried across the batch -> arbitrary.
            dimension_semantics=("parallel", "arbitrary"),
            vmem_limit_bytes=vmem_limit,
        ),
    )(lam, logits_cb, y_row)
    return jnp.sum(out)   # sum of per-core (already 1/B-scaled) partials = mean


def pcceve8_loss(y_pred: jax.Array, y: jax.Array, lambda_0=0.0,
                 tile_b: int | None = None) -> jax.Array:
    """y_pred: (B, C) logits (any float dtype); y: (B,) int labels. Scalar f32 loss.

    NOTE: prefer having the producer emit (C, B) logits and call
    `pcceve8_loss_cb` directly — the transpose here costs one extra HBM pass
    (no cast, no pad is performed).
    """
    return pcceve8_loss_cb(y_pred.T, y, lambda_0, tile_b=tile_b)


def _reference(y_pred, y, lambda_0):
    # Plain-JAX reference mirroring the PyTorch forward.
    logits = y_pred.astype(jnp.float32)
    logprob = jax.nn.log_softmax(logits, axis=1)
    ce = -jnp.take_along_axis(logprob, y[:, None].astype(jnp.int32), axis=1)[:, 0]
    pred = jnp.argmax(logits, axis=1)
    pos = jnp.array([1 if i in POSITIVE else 0 for i in range(logits.shape[1])], jnp.int32)
    weight = 1.0 + lambda_0 * (pos[y] != pos[pred]).astype(jnp.float32)
    return jnp.mean(ce * weight)


if __name__ == "__main__":
    key = jax.random.PRNGKey(0)
    k1, k2 = jax.random.split(key)

    # Check 1: f32, B=300 (not a multiple of 128), tile_b=128 -> grid (2, 2):
    # partial last block + a clamped/fully-masked overhang step on core 1.
    B = 300
    y_pred = jax.random.normal(k1, (B, NUM_CLASSES), dtype=jnp.float32)
    y = jax.random.randint(k2, (B,), 0, NUM_CLASSES, dtype=jnp.int32)
    lambda_0 = 0.5
    loss = pcceve8_loss(y_pred, y, lambda_0, tile_b=128)
    jax.block_until_ready(loss)
    ref = _reference(y_pred, y, lambda_0)
    assert jnp.allclose(loss, ref, rtol=1e-5, atol=1e-6), (loss, ref)

    # Check 2: bf16 logits streamed at native width (cast to f32 only in VMEM),
    # default tile size, different lambda passed dynamically via SMEM.
    B2 = 517
    k3, k4 = jax.random.split(k1)
    y_pred2 = jax.random.normal(k3, (B2, NUM_CLASSES), dtype=jnp.float32).astype(jnp.bfloat16)
    y2 = jax.random.randint(k4, (B2,), 0, NUM_CLASSES, dtype=jnp.int32)
    loss2 = pcceve8_loss(y_pred2, y2, 1.25)
    jax.block_until_ready(loss2)
    ref2 = _reference(y_pred2, y2, 1.25)
    assert jnp.allclose(loss2, ref2, rtol=1e-4, atol=1e-5), (loss2, ref2)

    print("KERNEL_OK")
</pallas_src>

<mosaic_0001>
module attributes {stable_mosaic.version = 11 : i64} {
  func.func @kernel(%arg0: i32, %arg1: i32, %arg2: memref<1xf32, #tpu.memory_space<smem>>, %arg3: memref<8x128xf32, #tpu.memory_space<vmem>>, %arg4: memref<1x128xi32, #tpu.memory_space<vmem>>, %arg5: memref<8x128xf32, #tpu.memory_space<vmem>>, %arg6: memref<1x1xf32, #tpu.memory_space<vmem>>) attributes {dimension_semantics = [#tpu.dimension_semantics<parallel>, #tpu.dimension_semantics<arbitrary>], iteration_bounds = array<i64: 2, 2>, scalar_prefetch = 0 : i64, scratch_operands = 1 : i64, tpu.core_type = #tpu.core_type<tc>, window_params = [{transform_indices = @transform_0, window_bounds = array<i64: 1>}, {transform_indices = @transform_1, window_bounds = array<i64: 8, 128>}, {transform_indices = @transform_2, window_bounds = array<i64: 1, 128>}, {transform_indices = @transform_3, window_bounds = array<i64: 8, 128>}]} {
    %c0_i32 = arith.constant 0 : i32
    %0 = arith.cmpi eq, %arg1, %c0_i32 : i32
    %1 = arith.extui %0 : i1 to i32
    %c0_i32_0 = arith.constant 0 : i32
    %2 = arith.cmpi ne, %1, %c0_i32_0 : i32
    scf.if %2 {
      %cst_23 = arith.constant 0.000000e+00 : f32
      %70 = vector.broadcast %cst_23 : f32 to vector<1x1xf32>
      %c0_24 = arith.constant 0 : index
      %c0_25 = arith.constant 0 : index
      %71 = vector.load %arg6[%c0_24, %c0_25] : memref<1x1xf32, #tpu.memory_space<vmem>>, vector<1x1xf32>
      tpu.vector_store %arg6[%c0_24, %c0_25], %70 {strides = array<i32>} : memref<1x1xf32, #tpu.memory_space<vmem>>, vector<1x1xf32>,
    } else {
    }
    %c0 = arith.constant 0 : index
    %3 = memref.load %arg2[%c0] : memref<1xf32, #tpu.memory_space<smem>>
    %c0_1 = arith.constant 0 : index
    %c0_2 = arith.constant 0 : index
    %4 = vector.load %arg3[%c0_1, %c0_2] : memref<8x128xf32, #tpu.memory_space<vmem>>, vector<8x128xf32>
    %c0_3 = arith.constant 0 : index
    %c0_4 = arith.constant 0 : index
    %5 = vector.load %arg4[%c0_3, %c0_4] : memref<1x128xi32, #tpu.memory_space<vmem>>, vector<1x128xi32>
    %6 = tpu.iota {dimensions = array<i32: 0>} : vector<8x128xi32>
    %7 = tpu.iota {dimensions = array<i32: 1>} : vector<1x128xi32>
    %cst = arith.constant dense<0xFF800000> : vector<128xf32>
    %8 = vector.multi_reduction <maximumf>, %4, %cst [0] : vector<8x128xf32> to vector<128xf32>
    %9 = vector.shape_cast %8 : vector<128xf32> to vector<1x128xf32>
    %10 = vector.broadcast %9 : vector<1x128xf32> to vector<8x128xf32>
    %11 = arith.subf %4, %10 : vector<8x128xf32>
    %12 = math.exp %11 : vector<8x128xf32>
    %cst_5 = arith.constant dense<0.000000e+00> : vector<128xf32>
    %13 = vector.multi_reduction <add>, %12, %cst_5 [0] : vector<8x128xf32> to vector<128xf32>
    %14 = vector.shape_cast %13 : vector<128xf32> to vector<1x128xf32>
    %15 = math.log %14 : vector<1x128xf32>
    %16 = vector.broadcast %5 : vector<1x128xi32> to vector<8x128xi32>
    %17 = arith.cmpi eq, %6, %16 : vector<8x128xi32>
    %cst_6 = arith.constant 0.000000e+00 : f32
    %18 = vector.broadcast %cst_6 : f32 to vector<8x128xf32>
    %19 = arith.select %17, %11, %18 : vector<8x128xi1>, vector<8x128xf32>
    %cst_7 = arith.constant dense<0.000000e+00> : vector<128xf32>
    %20 = vector.multi_reduction <add>, %19, %cst_7 [0] : vector<8x128xf32> to vector<128xf32>
    %21 = vector.shape_cast %20 : vector<128xf32> to vector<1x128xf32>
    %22 = arith.subf %15, %21 : vector<1x128xf32>
    %23 = vector.broadcast %9 : vector<1x128xf32> to vector<8x128xf32>
    %24 = arith.cmpf oeq, %4, %23 : vector<8x128xf32>
    %c8_i32 = arith.constant 8 : i32
    %25 = vector.broadcast %c8_i32 : i32 to vector<8x128xi32>
    %26 = arith.select %24, %6, %25 : vector<8x128xi1>, vector<8x128xi32>
    %cst_8 = arith.constant dense<2147483647> : vector<128xi32>
    %27 = vector.multi_reduction <minsi>, %26, %cst_8 [0] : vector<8x128xi32> to vector<128xi32>
    %28 = vector.shape_cast %27 : vector<128xi32> to vector<1x128xi32>
    %c0_i32_9 = arith.constant 0 : i32
    %c7_i32 = arith.constant 7 : i32
    %29 = vector.broadcast %c0_i32_9 : i32 to vector<1x128xi32>
    %30 = arith.maxsi %29, %5 : vector<1x128xi32>
    %31 = vector.broadcast %c7_i32 : i32 to vector<1x128xi32>
    %32 = arith.minsi %31, %30 : vector<1x128xi32>
    %c0_i32_10 = arith.constant 0 : i32
    %c7_i32_11 = arith.constant 7 : i32
    %33 = vector.broadcast %c0_i32_10 : i32 to vector<1x128xi32>
    %34 = arith.maxsi %33, %28 : vector<1x128xi32>
    %35 = vector.broadcast %c7_i32_11 : i32 to vector<1x128xi32>
    %36 = arith.minsi %35, %34 : vector<1x128xi32>
    %c210_i32 = arith.constant 210 : i32
    %37 = vector.broadcast %c210_i32 : i32 to vector<1x128xi32>
    %38 = arith.shrsi %37, %32 : vector<1x128xi32>
    %c1_i32 = arith.constant 1 : i32
    %39 = vector.broadcast %c1_i32 : i32 to vector<1x128xi32>
    %40 = arith.andi %38, %39 : vector<1x128xi32>
    %c210_i32_12 = arith.constant 210 : i32
    %41 = vector.broadcast %c210_i32_12 : i32 to vector<1x128xi32>
    %42 = arith.shrsi %41, %36 : vector<1x128xi32>
    %c1_i32_13 = arith.constant 1 : i32
    %43 = vector.broadcast %c1_i32_13 : i32 to vector<1x128xi32>
    %44 = arith.andi %42, %43 : vector<1x128xi32>
    %45 = arith.cmpi ne, %40, %44 : vector<1x128xi32>
    %46 = arith.extui %45 : vector<1x128xi1> to vector<1x128xi32>
    %47 = arith.sitofp %46 : vector<1x128xi32> to vector<1x128xf32>
    %48 = vector.broadcast %3 : f32 to vector<1x128xf32>
    %49 = arith.mulf %48, %47 : vector<1x128xf32>
    %cst_14 = arith.constant 1.000000e+00 : f32
    %50 = vector.broadcast %cst_14 : f32 to vector<1x128xf32>
    %51 = arith.addf %50, %49 : vector<1x128xf32>
    %c2_i32 = arith.constant 2 : i32
    %52 = arith.muli %arg0, %c2_i32 : i32
    %53 = arith.addi %52, %arg1 : i32
    %c128_i32 = arith.constant 128 : i32
    %54 = arith.muli %53, %c128_i32 : i32
    %55 = vector.broadcast %54 : i32 to vector<1x128xi32>
    %56 = arith.addi %55, %7 : vector<1x128xi32>
    %c300_i32 = arith.constant 300 : i32
    %57 = vector.broadcast %c300_i32 : i32 to vector<1x128xi32>
    %58 = arith.cmpi slt, %56, %57 : vector<1x128xi32>
    %59 = arith.mulf %22, %51 : vector<1x128xf32>
    %cst_15 = arith.constant 0.000000e+00 : f32
    %60 = vector.broadcast %cst_15 : f32 to vector<1x128xf32>
    %61 = arith.select %58, %59, %60 : vector<1x128xi1>, vector<1x128xf32>
    %c0_16 = arith.constant 0 : index
    %c0_17 = arith.constant 0 : index
    %62 = vector.load %arg6[%c0_16, %c0_17] : memref<1x1xf32, #tpu.memory_space<vmem>>, vector<1x1xf32>
    %cst_18 = arith.constant dense<0.000000e+00> : vector<1xf32>
    %63 = vector.multi_reduction <add>, %61, %cst_18 [1] : vector<1x128xf32> to vector<1xf32>
    %64 = vector.shape_cast %63 : vector<1xf32> to vector<1x1xf32>
    %65 = arith.addf %62, %64 : vector<1x1xf32>
    %c0_19 = arith.constant 0 : index
    %c0_20 = arith.constant 0 : index
    %66 = vector.load %arg6[%c0_19, %c0_20] : memref<1x1xf32, #tpu.memory_space<vmem>>, vector<1x1xf32>
    tpu.vector_store %arg6[%c0_19, %c0_20], %65 {strides = array<i32>} : memref<1x1xf32, #tpu.memory_space<vmem>>, vector<1x1xf32>,
    %c1_i32_21 = arith.constant 1 : i32
    %67 = arith.cmpi eq, %arg1, %c1_i32_21 : i32
    %68 = arith.extui %67 : i1 to i32
    %c0_i32_22 = arith.constant 0 : i32
    %69 = arith.cmpi ne, %68, %c0_i32_22 : i32
    scf.if %69 {
      %70 = tpu.iota {dimensions = array<i32: 0>} : vector<8x128xi32>
      %71 = tpu.iota {dimensions = array<i32: 1>} : vector<8x128xi32>
      %c0_i32_23 = arith.constant 0 : i32
      %72 = vector.broadcast %c0_i32_23 : i32 to vector<8x128xi32>
      %73 = arith.cmpi eq, %70, %72 : vector<8x128xi32>
      %c0_i32_24 = arith.constant 0 : i32
      %74 = vector.broadcast %c0_i32_24 : i32 to vector<8x128xi32>
      %75 = arith.cmpi eq, %71, %74 : vector<8x128xi32>
      %76 = arith.andi %73, %75 : vector<8x128xi1>
      %c0_25 = arith.constant 0 : index
      %c0_26 = arith.constant 0 : index
      %77 = vector.load %arg6[%c0_25, %c0_26] : memref<1x1xf32, #tpu.memory_space<vmem>>, vector<1x1xf32>
      %cst_27 = arith.constant 0.00333333341 : f32
      %78 = vector.broadcast %cst_27 : f32 to vector<1x1xf32>
      %79 = arith.mulf %77, %78 : vector<1x1xf32>
      %cst_28 = arith.constant 0.000000e+00 : f32
      %80 = vector.shape_cast %79 : vector<1x1xf32> to vector<1x1xf32>
      %81 = vector.broadcast %80 : vector<1x1xf32> to vector<8x128xf32>
      %82 = vector.broadcast %cst_28 : f32 to vector<8x128xf32>
      %83 = arith.select %76, %81, %82 : vector<8x128xi1>, vector<8x128xf32>
      %c0_29 = arith.constant 0 : index
      %c0_30 = arith.constant 0 : index
      %84 = vector.load %arg5[%c0_29, %c0_30] : memref<8x128xf32, #tpu.memory_space<vmem>>, vector<8x128xf32>
      tpu.vector_store %arg5[%c0_29, %c0_30], %83 {strides = array<i32>} : memref<8x128xf32, #tpu.memory_space<vmem>>, vector<8x128xf32>,
    } else {
    }
    return
  }
  func.func @transform_0(%arg0: i32, %arg1: i32) -> i32 {
    %c0_i32 = arith.constant 0 : i32
    %c0_i32_0 = arith.constant 0 : i32
    return %c0_i32 : i32
  }
  func.func @transform_1(%arg0: i32, %arg1: i32) -> (i32, i32) {
    %c2_i32 = arith.constant 2 : i32
    %0 = arith.muli %arg0, %c2_i32 : i32
    %1 = arith.addi %0, %arg1 : i32
    %c2_i32_0 = arith.constant 2 : i32
    %2 = arith.minsi %1, %c2_i32_0 : i32
    %c0_i32 = arith.constant 0 : i32
    %c0_i32_1 = arith.constant 0 : i32
    return %c0_i32, %2 : i32, i32
  }
  func.func @transform_2(%arg0: i32, %arg1: i32) -> (i32, i32) {
    %c2_i32 = arith.constant 2 : i32
    %0 = arith.muli %arg0, %c2_i32 : i32
    %1 = arith.addi %0, %arg1 : i32
    %c2_i32_0 = arith.constant 2 : i32
    %2 = arith.minsi %1, %c2_i32_0 : i32
    %c0_i32 = arith.constant 0 : i32
    %c0_i32_1 = arith.constant 0 : i32
    return %c0_i32, %2 : i32, i32
  }
  func.func @transform_3(%arg0: i32, %arg1: i32) -> (i32, i32) {
    %c0_i32 = arith.constant 0 : i32
    %c0_i32_0 = arith.constant 0 : i32
    return %arg0, %c0_i32 : i32, i32
  }
}

</mosaic_0001>

<bundles_post_ra>
// kernel: pcceve8_loss_cb.1
= control target key start
LH: loop header
LB: loop body
LE: loop exit
PB: predicated region body
PF: predicated region fallthrough
CT: control target
= control target key end

     0   :  { %s852_s0 = inlined_call_operand.<no memory space> [shape: f32[1], index: 0, kind: input, shape index: {}]   ;;  %s853_s1 = inlined_call_operand.hbm [shape: f32[8,300], index: 1, kind: input, shape index: {}]   ;;  %s854_s2 = inlined_call_operand.vmem [shape: s32[1,300], index: 2, kind: input, shape index: {}]   ;;  %s855_s3 = inlined_call_operand.vmem [shape: f32[16,128], index: 3, kind: output, shape index: {}]  }
   0x1   :  { %8 = sst [smem:[#allocation3]] %s852_s0 }
   0x2   :  { %9 = vsyncpa [#allocation5], 0 }
   0x3   :  { %11 = vsyncpa [#allocation5 + $0x1], 0  ;;  %s681_s14 = smov 0   ;;  %s683_s15 = smov 0  }
   0x4   :  { %s685_s16 = smov 0   ;;  %s687_s17 = smov 0  }
   0x5   :  { %s689_s18 = smov 0   ;;  %s691_s19 = smov 0  }
   0x6   :  { %s693_s20 = smov 0   ;;  %s695_s21 = smov 0  }
   0x7 LB: > { %s450_s0 = sadd.s32 4294967295, %s651_s21   ;;  %s26_s22 = sadd.s32 1, %s643_s19  ;;  %s651_s21 = sphi %s695_s21, %s17_s21   ;;  %s647_s20 = sphi %s693_s20, %s867_s20   ;;  %s643_s19 = sphi %s691_s19, %s866_s19   ;;  %s639_s18 = sphi %s689_s18, %s865_s18   ;;  %s635_s17 = sphi %s687_s17, %s864_s17   ;;  %s631_s16 = sphi %s685_s16, %s863_s16   ;;  %s627_s15 = sphi %s683_s15, %s862_s15   ;;  %s623_s14 = sphi %s681_s14, %s861_s14  }
   0x8   : > { %p27_p0 = scmp.ge.s32.totalorder %s26_s22, 2  ;;  %s29_s23 = sadd.s32 1, %s647_s20 }
   0x9   : > { %s452_s24 = sshll.u32 %s647_s20, 1  ;;  %s65_s25 = sadd.s32 1, %s631_s16 }
   0xa   : > { %s869_s22 = smov (%p27_p0, %s26_s22), 0  ;;  %s871_s23 = smov (!%p27_p0, %s29_s23), %s647_s20 }
   0xb   : > { %s55_s26 = sadd.s32 %s643_s19, %s452_s24  ;;  %p72_p1 = scmp.ne.s32.totalorder %s631_s16, %s627_s15 }
   0xc   : > { %p31_p2 = scmp.ge.s32.totalorder %s871_s23, 2  ;;  %p56_p3 = scmp.lt.s32.totalorder %s55_s26, 2 }
   0xd   : > { %p73_p4 = scmp.eq.s32.totalorder %s651_s21, 0  ;;  %p78_p5 = scmp.ne.s32.totalorder %s627_s15, %s623_s14 }
   0xe   : > { %s873_s23 = smov (%p31_p2, %s871_s23), 0  ;;  %s875_s26 = smov (!%p56_p3, %s55_s26), 2 }
   0xf   : > { %s453_s27 = sshll.u32 %s873_s23, 1  ;;  %p735_p6 = por %p73_p4, %p72_p1 }
  0x10   : > { %s59_s29 = sadd.s32 %s453_s27, %s869_s22  ;;  %p79_p7 = scmp.eq.s32.totalorder %s450_s0, 0 }
  0x11   : > { %p60_p8 = scmp.lt.s32.totalorder %s59_s29, 2  ;;  %p481_p10 = scmp.lt.s32.totalorder %s651_s21, 4 }
  0x12   : > { %p740_p9 = por %p79_p7, %p78_p5  ;;  %s165_s4 = sand.u32 1, %s631_s16  }
  0x13   : > { %s877_s29 = smov (!%p60_p8, %s59_s29), 2  ;;  %s460_s5 = sshll.u32 %s875_s26, 7 }
  0x14   : > { %s62_s6 = ssub.s32 %s875_s26, %s877_s29  ;;  %s458_s7 = sshll.u32 %s165_s4, 3 }
  0x15   : > { %p63_p11 = scmp.eq.s32.totalorder %s62_s6, 0  ;;  %s749_s10 = scalar_lea.hbm %s853_s1, %s460_s5 }
  0x16   : > { %s169_s12 = scalar_lea.vmem [#allocation4], %s458_s7  ;;  %p756_p12 = pnand %p481_p10, %p735_p6 }
  0x17   : > { %s752_s11 = scalar_select %p63_p11, %s631_s16, %s65_s25  }
  0x18   : > { %s180_s13 = sshll.u32 %s169_s12, 4  ;;  %s166_s0 = scalar_lea.sflag [#allocation5], %s165_s4  ;;  %s760_s13 = int_to_ptr.vmem [resolvable:$true] %s180_s13 }
  0x19   : > { %s555_s24 = scalar_lea.hbm %s749_s10, 128  ;;  %p557_p2 = pneg %p756_p12 }
  0x1a   : > { %p556_p1 = scmp.ne.s32.totalorder %s749_s10, %s555_s24  ;;  %s560_s27 = scalar_lea.hbm %s853_s1, 384 }
  0x1b   : > { %p561_p5 = scmp.lt.u32.totalorder %s749_s10, %s853_s1  ;;  %p562_p6 = scmp.lt.u32.totalorder %s560_s27, %s555_s24 }
  0x1c   : > { %p558_p3 = pnand %p557_p2, %p556_p1  ;;  %p564_p8 = scmp.lt.u32.totalorder %s555_s24, %s749_s10 }
  0x1d   : > { %p563_p7 = por %p562_p6, %p561_p5 }
  0x1e   : > { %p559_p4 = pneg %p558_p3 }
  0x1f   : > { %p565_p10 = por %p564_p8, %p563_p7 }
  0x21   : > { %p566_p11 = pnand %p565_p10, %p559_p4 }
  0x23   : > { %569 = shalt.err (!%p566_p11)
}
  0x24   : > { %s570_s4 = scalar_lea.vmem %s760_s13, 128  ;;  %s653_s5 = smov [#allocation4]  }
  0x25   : > { %p571_p1 = scmp.ne.s32.totalorder %s760_s13, %s570_s4  ;;  %s575_s6 = sshll.u32 %s653_s5, 4  ;;  %s576_s6 = int_to_ptr.vmem [resolvable:$false] %s575_s6 }
  0x26   : > { %s577_s7 = scalar_lea.vmem %s576_s6, 256  ;;  %p578_p0 = scmp.lt.s32.totalorder %s760_s13, %s576_s6 }
  0x27   : > { %p573_p3 = pnand %p571_p1, %p557_p2  ;;  %p579_p5 = scmp.lt.s32.totalorder %s577_s7, %s570_s4 }
  0x29   : > { %p574_p13 = pneg %p573_p3  ;;  %p580_p6 = por %p579_p5, %p578_p0 }
  0x2b   : > { %p581_p7 = pnand %p580_p6, %p574_p13 }
  0x2d   : > { %584 = shalt.err (!%p581_p7)
}
  0x2e   : > { %480 = dma.hbm_to_vmem [thread:$0]  (!%p756_p12), %s749_s10, 128, %s760_s13, %s166_s0  }
  0x2f   : > { %p859_p4 = scmp.lt.s32.totalorder %s651_s21, 5  ;;  %p860_p8 = scmp.ge.s32.totalorder %s651_s21, 1 }
  0x31   : > { %p200_p2 = pnand %p860_p8, %p859_p4 }
  0x32   : > { %s205_s8 = sand.u32 (!%p200_p2), 1, %s627_s15  }
  0x33   : > { %203 = sbr.rel (%p200_p2) target bundleno = 414 (0x19e), region = 32  ;;  %s462_s9 = sshll.u32 (!%p200_p2), %s205_s8, 3 }
  0x34   : > { %s206_s12 = scalar_lea.sflag (!%p200_p2), [#allocation5], %s205_s8  ;;  %s209_s24 = scalar_lea.vmem (!%p200_p2), [#allocation4], %s462_s9 }
  0x3a   : > { %618 = dma.done.wait (%p740_p9), %s206_s12, 128  }
  0x3b   : > { %620 = vsyncadd (%p740_p9), %s206_s12, 4294967168  ;;  %s463_s10 = sshll.u32 %s639_s18, 1  ;;  %p253_p12 = scmp.lt.s32.totalorder %s639_s18, 1 }
  0x3c   : > { %s801_s13 = sadd.s32 %s635_s17, %s463_s10  ;;  %p468_p9 = scmp.ne.s32.totalorder %s635_s17, 0 }
  0x3d   : > { %p244_p13 = scmp.lt.s32.totalorder %s801_s13, 2  ;;  %s879_s18 = smov (!%p253_p12, %s639_s18), 1  ;;  %vm261_vm0 = vcmask (!%p468_p9), 0   ;;  %v654_v0 = vmov (!%p468_p9), 0.0  }
  0x3e   : > { %s467_s0 = sshll.u32 %s879_s18, 3  ;;  %260 = sbr.rel (%p468_p9) target bundleno = 69 (0x45), region = 40  ;;  %262 = vst.msk [vmem:[#allocation2] sm:$0x1] (!%p468_p9), %vm261_vm0, %v654_v0 }
  0x3f   : > { %s245_s14 = scalar_select %p244_p13, %s801_s13, 2 }
  0x40   : > { %s809_s30 = scalar_lea.vmem %s855_s3, %s467_s0 }
  0x41   : > { %s881_s14 = smov (!%p244_p13, %s245_s14), 2 }
  0x42   : > { %s248_s29 = scalar_lea.vmem %s854_s2, %s881_s14 }
  0x45 PF: > { %v264_v1 = vld [vmem:[%s209_s24] sm:$0xff]  ;;  %v266_v5 = vlaneseq  ;;  %v265_v15 = vld [vmem:[%s248_s29] sm:$0x1]  ;;  %v655_v33 = vmov 210   ;;  %s263_s18 = sld [smem:[#allocation3]]  ;;  %v656_v43 = vmov 0.0  }
  0x46   : > { %v270_v2 = vrot.slane %v264_v1, 4  ;;  %vm311_vm4 = vcmp.gt.s32.totalorder %v265_v15, 0  ;;  %s471_s4 = sshll.u32 %s801_s13, 7  ;;  %vm338_vm12 = vcmask 1040384   ;;  %v337_v59 = vld [vmem:[#allocation2] sm:$0x1] }
  0x47   : > { %v815_v8 = vshrl.u32 %v266_v5, 7  ;;  %v312_v21 = vsel %vm311_vm4, %v265_v15, 0  ;;  %v269_v47 = vand.u32 127, %v266_v5  ;;  %v332_v49 = vstv %s471_s4  ;;  %p472_p0 = scmp.ne.s32.totalorder %s635_s17, 1 }
  0x48   : > { %v271_v3 = vmax.f32 %v264_v1, %v270_v2  ;;  %vm313_vm7 = vcmp.lt.s32.totalorder %v312_v21, 7  ;;  %vm343_vm13 = vcmask 0   ;;  %v657_v63 = vmov (!%p472_p0), 0  }
  0x49   : > { %v289_v13 = vsub.s32 0, %v815_v8  ;;  %v314_v29 = vsel %vm313_vm7, %v312_v21, 7  ;;  %v333_v52 = vadd.s32 %v332_v49, %v269_v47  ;;  %554 = vset.pattern.permute.xlu0 (!%p472_p0), %v657_v63  ;;  %vm349_vm14 = vcmp.eq.s32.totalorder (!%p472_p0), %v815_v8, 0 }
  0x4a   : > { %v272_v4 = vrot.slane %v271_v3, 2  ;;  %v319_v34 = vshra.s32 %v655_v33, %v314_v29  ;;  %vm350_vm15 = vcmp.eq.s32.totalorder (!%p472_p0), %v269_v47, 0 }
  0x4b   : > { %v290_v17 = vrot.slane %v265_v15, %v289_v13  ;;  %v326_v45 = vstv %s263_s18  ;;  %vm334_vm11 = vcmp.lt.s32.totalorder %v333_v52, 300  ;;  %vm351_vm0 = vmand (!%p472_p0), %vm349_vm14, %vm350_vm15 }
  0x4c   : > { %v273_v6 = vmax.f32 %v271_v3, %v272_v4  ;;  %v320_v39 = vand.u32 1, %v319_v34 }
  0x4d   : > { %vm291_vm5 = vcmp.eq.s32.totalorder %v815_v8, %v290_v17 }
  0x4e   : > { %v274_v7 = vrot.slane %v273_v6, 1 }
  0x50   : > { %v275_v9 = vmax.f32 %v273_v6, %v274_v7 }
  0x52   : > { %v276_v10 = vsub.f32 %v264_v1, %v275_v9  ;;  %vm300_vm1 = vcmp.eq.f32.partialorder %v264_v1, %v275_v9 }
  0x53   : > { %v301_v11 = vsel %vm300_vm1, %v815_v8, 8 }
  0x54   : > { %v277_v12 = vmul.f32 1.442695, %v276_v10  ;;  %v302_v14 = vrot.slane %v301_v11, 4  ;;  %v292_v22 = vsel %vm291_vm5, %v276_v10, 0.0 }
  0x55   : > { %v293_v27 = vrot.slane %v292_v22, 4 }
  0x56   : > { %550 = vpow2.f32 %v277_v12  ;;  %vm303_vm2 = vcmp.lt.s32.totalorder %v301_v11, %v302_v14 }
  0x57   : > { %v304_v16 = vsel %vm303_vm2, %v301_v11, %v302_v14  ;;  %v294_v32 = vadd.f32 %v293_v27, %v292_v22 }
  0x58   : > { %v305_v18 = vrot.slane %v304_v16, 2 }
  0x59   : > { %v295_v38 = vrot.slane %v294_v32, 2 }
  0x5a   : > { %vm306_vm3 = vcmp.lt.s32.totalorder %v304_v16, %v305_v18 }
  0x5b   : > { %v307_v19 = vsel %vm306_vm3, %v304_v16, %v305_v18  ;;  %v296_v42 = vadd.f32 %v295_v38, %v294_v32 }
  0x5c   : > { %v308_v20 = vrot.slane %v307_v19, 1 }
  0x5d   : > { %v297_v46 = vrot.slane %v296_v42, 1 }
  0x5e   : > { %vm309_vm6 = vcmp.lt.s32.totalorder %v307_v19, %v308_v20 }
  0x5f   : > { %v310_v23 = vsel %vm309_vm6, %v307_v19, %v308_v20  ;;  %v298_v50 = vadd.f32 %v297_v46, %v296_v42 }
  0x60   : > { %v551_v24 = vpop.eup %550  ;;  %vm315_vm8 = vcmp.gt.s32.totalorder %v310_v23, 0 }
  0x61   : > { %v279_v25 = vrot.slane %v551_v24, 4  ;;  %v316_v26 = vsel %vm315_vm8, %v310_v23, 0 }
  0x62   : > { %vm317_vm9 = vcmp.lt.s32.totalorder %v316_v26, 7 }
  0x63   : > { %v280_v28 = vadd.f32 %v551_v24, %v279_v25  ;;  %v318_v30 = vsel %vm317_vm9, %v316_v26, 7 }
  0x64   : > { %v321_v35 = vshra.s32 %v655_v33, %v318_v30 }
  0x65   : > { %v281_v31 = vrot.slane %v280_v28, 2 }
  0x66   : > { %v322_v40 = vand.u32 1, %v321_v35 }
  0x67   : > { %v282_v36 = vadd.f32 %v281_v31, %v280_v28 }
  0x68   : > { %vm323_vm10 = vcmp.ne.s32.totalorder %v320_v39, %v322_v40 }
  0x69   : > { %v283_v37 = vrot.slane %v282_v36, 1  ;;  %v469_v44 = vsel %vm323_vm10, 1.0, %v656_v43 }
  0x6a   : > { %v327_v48 = vmul.f32 %v469_v44, %v326_v45 }
  0x6b   : > { %v284_v41 = vadd.f32 %v283_v37, %v282_v36 }
  0x6c   : > { %v328_v54 = vadd.f32 1.0, %v327_v48 }
  0x6d   : > { %552 = vlog2.f32 %v284_v41 }
  0x77   : > { %v553_v51 = vpop.eup %552 }
  0x78   : > { %v286_v53 = vmul.f32 0.6931472, %v553_v51 }
  0x7a   : > { %v299_v55 = vsub.f32 %v286_v53, %v298_v50 }
  0x7c   : > { %v335_v56 = vmul.f32 %v328_v54, %v299_v55 }
  0x7e   : > { %v336_v57 = vsel %vm334_vm11, %v335_v56, 0.0 }
  0x7f   : > { %v339_v58 = vsel %vm338_vm12, %v336_v57, 0.0 }
  0x80   : > { %340 = vadd.xlane.f32.xlu0 %v339_v58 }
 0x10a   : > { %348 = sbr.rel (%p472_p0) target bundleno = 414 (0x19e), region = 44 }
 0x10d   : > { %v341_v60 = vpop.xlane.xlu0 %340 }
 0x10e   : > { %v342_v61 = vadd.f32 %v341_v60, %v337_v59 }
 0x110   : > { %344 = vst.msk [vmem:[#allocation2] sm:$0x1] %vm343_vm13, %v342_v61 }
 0x117   : > { %v352_v62 = vld [vmem:[#allocation2] sm:$0x1] }
 0x118   : > { %v353_v0 = vmul.f32 0.0033333334, %v352_v62 }
 0x11a   : > { %v358_v1 = vrot.slane %v353_v0, %v289_v13 }
 0x11c   : > { %360 = vperm.xlu0 %554, %v358_v1  }
 0x19b   : > { %v361_v2 = vpop.permute.xlu0 %360 }
 0x19c   : > { %v363_v3 = vsel %vm351_vm0, %v361_v2, 0.0 }
 0x19d   : > { %364 = vst [vmem:[%s809_s30] sm:$0xff] %v363_v3 }
 0x19e PF: > { %s17_s21 = sadd.s32 1, %s651_s21   ;;  %s861_s14 = smov %s627_s15 }
 0x19f   : > { %p14_p10 = scmp.ge.s32.totalorder %s17_s21, 6   ;;  %s862_s15 = smov %s631_s16 }
 0x1a0   : > { %s863_s16 = smov %s752_s11  ;;  %s864_s17 = smov %s643_s19 }
 0x1a1   : > { %s865_s18 = smov %s647_s20  ;;  %s866_s19 = smov %s869_s22 }
 0x1a2   : > { %s867_s20 = smov %s873_s23  ;;  %16 = sbr.rel (!%p14_p10) target bundleno = 7 (0x7), region = 83 }
 0x1a9   :  { %384 = vsyncpa [#allocation5], 1 }
 0x1aa   :  { %386 = vsyncpa [#allocation5 + $0x1], 1 }

</bundles_post_ra>
